<compile_context>
chip_gen: v6e
topology: v6e:2x2x1
jax: 0.10.0
libtpu: 0.0.40
codegen_flags: <defaults>
</compile_context>

<pallas_src>
import jax
import jax.numpy as jnp
from jax.experimental import pallas as pl
from jax.experimental.pallas import tpu as pltpu


def mlp_kernel(x_ref, p_ref, o_ref):
    # x_ref : (B, in_dim)            f32, VMEM
    # p_ref : (in_dim + 3, hidden)   f32, VMEM  == [W1 ; b1 ; W2^T ; b2*ones]
    # o_ref : (B, 1)                 f32, VMEM
    in_dim = x_ref.shape[1]

    w1 = p_ref[:in_dim, :]                     # (in_dim, hidden)
    b1 = p_ref[in_dim:in_dim + 1, :]           # (1, hidden)
    w2t = p_ref[in_dim + 1:in_dim + 2, :]      # (1, hidden)  == W2^T
    b2 = p_ref[in_dim + 2:in_dim + 3, 0:1]     # (1, 1)

    # hidden = relu(x @ W1 + b1)                -> (B, hidden), MXU + VPU
    h = jnp.dot(x_ref[...], w1, preferred_element_type=jnp.float32) + b1
    h = jnp.maximum(h, 0.0)
    # out = sum_h hidden[:, h] * W2[h] + b2     -> (B, 1), VPU + XLU
    out = jnp.sum(h * w2t, axis=1, keepdims=True) + b2
    o_ref[...] = out.astype(o_ref.dtype)


def custom_regression_forward(x, w1, b1, w2, b2):
    """Pallas implementation of CustomRegressionModel.forward.

    x : (B, input_size) float32
    w1: (input_size, hidden) float32
    b1: (hidden,)            float32
    w2: (hidden, 1)          float32
    b2: (1,)                 float32
    returns (B, 1) float32
    """
    B, in_dim = x.shape
    hidden = w1.shape[1]
    out_dim = w2.shape[1]
    assert out_dim == 1, "model spec has a single regression output"

    # Pack all parameters into a single VMEM operand (one DMA instead of four).
    params = jnp.concatenate(
        [
            w1,                                          # (in_dim, hidden)
            b1.reshape(1, hidden),                       # (1, hidden)
            w2.T,                                        # (1, hidden) == W2^T
            jnp.broadcast_to(b2.reshape(1, 1), (1, hidden)),  # (1, hidden)
        ],
        axis=0,
    )  # (in_dim + 3, hidden)

    cost = pl.CostEstimate(
        flops=2 * B * in_dim * hidden + 2 * B * hidden,
        transcendentals=0,
        bytes_accessed=4 * (B * in_dim + (in_dim + 3) * hidden + B * out_dim),
    )

    return pl.pallas_call(
        mlp_kernel,
        out_shape=jax.ShapeDtypeStruct((B, out_dim), x.dtype),
        in_specs=[
            pl.BlockSpec(memory_space=pltpu.MemorySpace.VMEM),   # x
            pl.BlockSpec(memory_space=pltpu.MemorySpace.VMEM),   # packed params
        ],
        out_specs=pl.BlockSpec(memory_space=pltpu.MemorySpace.VMEM),
        cost_estimate=cost,
    )(x, params)


def reference_forward(x, w1, b1, w2, b2):
    h = jnp.maximum(x @ w1 + b1, 0.0)
    return h @ w2 + b2


if __name__ == "__main__":
    key = jax.random.PRNGKey(0)
    k_x, k_w1, k_b1, k_w2, k_b2 = jax.random.split(key, 5)

    batch = 64
    input_size = 8      # X_train.shape[1] analogue
    hidden_size = 16
    output_size = 1

    x = jax.random.normal(k_x, (batch, input_size), dtype=jnp.float32)
    # Parameters initialized like torch.randn (standard normal), deterministic.
    w1 = jax.random.normal(k_w1, (input_size, hidden_size), dtype=jnp.float32)
    b1 = jax.random.normal(k_b1, (hidden_size,), dtype=jnp.float32)
    w2 = jax.random.normal(k_w2, (hidden_size, output_size), dtype=jnp.float32)
    b2 = jax.random.normal(k_b2, (output_size,), dtype=jnp.float32)

    # jit so the param pack + custom call compile into one executable
    # (single host dispatch; the pack is trivially fused / hoisted by XLA).
    fwd = jax.jit(custom_regression_forward)
    out = jax.block_until_ready(fwd(x, w1, b1, w2, b2))

    ref = reference_forward(x, w1, b1, w2, b2)
    assert out.shape == (batch, output_size)
    assert jnp.allclose(out, ref, atol=1e-5, rtol=1e-5), "mismatch vs reference"

    print("KERNEL_OK")
</pallas_src>

<mosaic_0001>
module attributes {stable_mosaic.version = 11 : i64} {
  func.func @mlp_kernel(%arg0: memref<64x8xf32, #tpu.memory_space<vmem>>, %arg1: memref<11x16xf32, #tpu.memory_space<vmem>>, %arg2: memref<64x1xf32, #tpu.memory_space<vmem>>) attributes {dimension_semantics = [], scalar_prefetch = 0 : i64, scratch_operands = 0 : i64, tpu.core_type = #tpu.core_type<tc>} {
    %c0 = arith.constant 0 : index
    %c0_0 = arith.constant 0 : index
    %0 = vector.load %arg1[%c0, %c0_0] : memref<11x16xf32, #tpu.memory_space<vmem>>, vector<8x16xf32>
    %c8 = arith.constant 8 : index
    %c0_1 = arith.constant 0 : index
    %1 = vector.load %arg1[%c8, %c0_1] : memref<11x16xf32, #tpu.memory_space<vmem>>, vector<1x16xf32>
    %c9 = arith.constant 9 : index
    %c0_2 = arith.constant 0 : index
    %2 = vector.load %arg1[%c9, %c0_2] : memref<11x16xf32, #tpu.memory_space<vmem>>, vector<1x16xf32>
    %c10 = arith.constant 10 : index
    %c0_3 = arith.constant 0 : index
    %3 = vector.load %arg1[%c10, %c0_3] : memref<11x16xf32, #tpu.memory_space<vmem>>, vector<1x1xf32>
    %c0_4 = arith.constant 0 : index
    %c0_5 = arith.constant 0 : index
    %4 = vector.load %arg0[%c0_4, %c0_5] : memref<64x8xf32, #tpu.memory_space<vmem>>, vector<64x8xf32>
    %cst = arith.constant dense<0.000000e+00> : vector<64x16xf32>
    %5 = tpu.matmul %4, %0, %cst {dimension_numbers = #tpu.dot_dimension_numbers<[1], [0], [0], [1], [0, 0, 1, 1], [], []>} : vector<64x8xf32>, vector<8x16xf32>, vector<64x16xf32> -> vector<64x16xf32>
    %6 = vector.broadcast %1 : vector<1x16xf32> to vector<64x16xf32>
    %7 = arith.addf %5, %6 : vector<64x16xf32>
    %cst_6 = arith.constant 0.000000e+00 : f32
    %8 = vector.broadcast %cst_6 : f32 to vector<64x16xf32>
    %9 = arith.maximumf %7, %8 : vector<64x16xf32>
    %10 = vector.broadcast %2 : vector<1x16xf32> to vector<64x16xf32>
    %11 = arith.mulf %9, %10 : vector<64x16xf32>
    %cst_7 = arith.constant dense<0.000000e+00> : vector<64xf32>
    %12 = vector.multi_reduction <add>, %11, %cst_7 [1] : vector<64x16xf32> to vector<64xf32>
    %13 = vector.shape_cast %12 : vector<64xf32> to vector<64x1xf32>
    %14 = vector.broadcast %3 : vector<1x1xf32> to vector<64x1xf32>
    %15 = arith.addf %13, %14 : vector<64x1xf32>
    %c0_8 = arith.constant 0 : index
    %c0_9 = arith.constant 0 : index
    %16 = vector.load %arg2[%c0_8, %c0_9] : memref<64x1xf32, #tpu.memory_space<vmem>>, vector<64x1xf32>
    tpu.vector_store %arg2[%c0_8, %c0_9], %15 {strides = array<i32>} : memref<64x1xf32, #tpu.memory_space<vmem>>, vector<64x1xf32>,
    return
  }
}

</mosaic_0001>

<bundles_post_ra>
// kernel: custom_regression_forward.1
= control target key start
LH: loop header
LB: loop body
LE: loop exit
PB: predicated region body
PF: predicated region fallthrough
CT: control target
= control target key end

     0   :  { %vm27_vm0 = vcmask 64512   ;;  %vm177_vm1 = vcmask 130048   ;;  %vm214_vm2 = vcmask 7168   ;;  %s362_s1 = inlined_call_operand.vmem [shape: f32[11,16], index: 1, kind: input, shape index: {}]   ;;  %s363_s0 = inlined_call_operand.vmem [shape: f32[64,8], index: 0, kind: input, shape index: {}]   ;;  %s364_s2 = inlined_call_operand.vmem [shape: f32[64,1], index: 2, kind: output, shape index: {}]  }
   0x1   :  { %v11_v0 = vld [vmem:[%s362_s1] sm:$0xff]  ;;  %v16_v3 = vld [vmem:[%s363_s0 + $0x8] sm:$0xff]  ;;  %v17_v5 = vld [vmem:[%s363_s0 + $0x10] sm:$0xff] }
   0x2   :  { %247 = vmatprep.subr.mxu0 %v11_v0  ;;  %261 = vmatprep.subr.mxu1 %v11_v0  ;;  %v15_v1 = vld [vmem:[%s363_s0] sm:$0xff]  ;;  %v20_v4 = vld [vmem:[%s363_s0 + $0x28] sm:$0xff]  ;;  %v21_v6 = vld [vmem:[%s363_s0 + $0x30] sm:$0xff] }
   0x3   :  { %v19_v2 = vld [vmem:[%s363_s0 + $0x20] sm:$0xff]  ;;  %248 = vmatpush3.msra.mxu0 %v11_v0  ;;  %262 = vmatpush3.msra.mxu1 %v11_v0  ;;  %v18_v7 = vld [vmem:[%s363_s0 + $0x18] sm:$0xff]  ;;  %v227_v9 = vld [vmem:[%s362_s1 + $0x8] ss:$0 sm:$0xff] }
   0x4   :  { %249 = vmatprep.mubr.msk.f32.mxu0 %vm27_vm0, %v15_v1  ;;  %255 = vmatprep.mubr.msk.f32.mxu1 %vm27_vm0, %v19_v2  ;;  %v22_v8 = vld [vmem:[%s363_s0 + $0x38] sm:$0xff]  ;;  %v236_v14 = vld [vmem:[%s362_s1 + $0x9] ss:$0 sm:$0xff]  ;;  %v237_v51 = vld [vmem:[%s362_s1 + $0xa] ss:$0 sm:$0xff] }
   0x5   :  { %250 = vmatmul.mubr.msk.f32.vlgmr.msra.gmra.mxu0 %vm27_vm0, %v16_v3  ;;  %256 = vmatmul.mubr.msk.f32.vlgmr.msra.gmra.mxu1 %vm27_vm0, %v20_v4 }
   0x6   :  { %252 = vmatprep.mubr.msk.f32.mxu0 %vm27_vm0, %v17_v5  ;;  %258 = vmatprep.mubr.msk.f32.mxu1 %vm27_vm0, %v21_v6 }
   0x9   :  { %253 = vmatmul.mubr.msk.f32.gmra.mxu0 %vm27_vm0, %v18_v7  ;;  %259 = vmatmul.mubr.msk.f32.gmra.mxu1 %vm27_vm0, %v22_v8 }
  0xc5   :  { %v251_v10 = vpop.f32.mrf.mxu0  ;;  %v257_v11 = vpop.f32.mrf.mxu1 }
  0xc6   :  { %v124_v12 = vadd.f32 %v251_v10, %v227_v9  ;;  %v144_v13 = vadd.f32 %v257_v11, %v227_v9 }
  0xc7   :  { %v118_v15 = vpop.f32.mrf.mxu0  ;;  %v138_v16 = vpop.f32.mrf.mxu1 }
  0xc8   :  { %v158_v17 = vmax.f32 %v124_v12, 0.0  ;;  %v162_v18 = vmax.f32 %v144_v13, 0.0  ;;  %v119_v19 = vadd.f32 %v227_v9, %v118_v15  ;;  %v139_v20 = vadd.f32 %v227_v9, %v138_v16 }
  0xc9   :  { %v254_v21 = vpop.f32.mrf.mxu0  ;;  %v260_v22 = vpop.f32.mrf.mxu1 }
  0xca   :  { %v157_v23 = vmax.f32 %v119_v19, 0.0  ;;  %v134_v24 = vadd.f32 %v254_v21, %v227_v9  ;;  %v174_v25 = vmul.f32 %v236_v14, %v162_v18  ;;  %v170_v27 = vmul.f32 %v236_v14, %v158_v17 }
  0xcb   :  { %v128_v26 = vpop.f32.mrf.mxu0  ;;  %v148_v28 = vpop.f32.mrf.mxu1  ;;  %v154_v32 = vadd.f32 %v260_v22, %v227_v9  ;;  %v161_v33 = vmax.f32 %v139_v20, 0.0 }
  0xcc   :  { %v160_v29 = vmax.f32 %v134_v24, 0.0  ;;  %v129_v30 = vadd.f32 %v227_v9, %v128_v26  ;;  %v193_v31 = vsel %vm177_vm1, %v174_v25, 0.0  ;;  %v181_v34 = vsel %vm177_vm1, %v170_v27, 0.0 }
  0xcd   :  { %194 = vadd.xlane.f32.xlu1 %v193_v31  ;;  %v149_v35 = vadd.f32 %v227_v9, %v148_v28  ;;  %v169_v36 = vmul.f32 %v236_v14, %v157_v23  ;;  %182 = vadd.xlane.f32.xlu0 %v181_v34  ;;  %v164_v39 = vmax.f32 %v154_v32, 0.0  ;;  %v173_v44 = vmul.f32 %v236_v14, %v161_v33 }
  0xce   :  { %v159_v37 = vmax.f32 %v129_v30, 0.0  ;;  %v172_v38 = vmul.f32 %v236_v14, %v160_v29 }
  0xcf   :  { %v163_v42 = vmax.f32 %v149_v35, 0.0  ;;  %v178_v43 = vsel %vm177_vm1, %v169_v36, 0.0  ;;  %v176_v46 = vmul.f32 %v236_v14, %v164_v39  ;;  %v190_v47 = vsel %vm177_vm1, %v173_v44, 0.0 }
  0xd0   :  { %v187_v40 = vsel %vm177_vm1, %v172_v38, 0.0  ;;  %v171_v41 = vmul.f32 %v236_v14, %v159_v37 }
  0xd1   :  { %188 = vadd.xlane.f32.xlu1 %v187_v40  ;;  %179 = vadd.xlane.f32.xlu0 %v178_v43  ;;  %v175_v48 = vmul.f32 %v236_v14, %v163_v42  ;;  %v199_v49 = vsel %vm177_vm1, %v176_v46, 0.0 }
  0xd2   :  { %v184_v45 = vsel %vm177_vm1, %v171_v41, 0.0 }
  0xd3   :  { %v196_v50 = vsel %vm177_vm1, %v175_v48, 0.0 }
  0xd5   :  { %185 = vadd.xlane.f32.xlu1 %v184_v45  ;;  %191 = vadd.xlane.f32.xlu0 %v190_v47 }
  0xd9   :  { %200 = vadd.xlane.f32.xlu1 %v199_v49  ;;  %197 = vadd.xlane.f32.xlu0 %v196_v50 }
 0x156   :  { %v195_v52 = vpop.xlane.xlu1 %194  ;;  %v183_v54 = vpop.xlane.xlu0 %182 }
 0x157   :  { %v211_v53 = vadd.f32 %v237_v51, %v195_v52  ;;  %v207_v55 = vadd.f32 %v237_v51, %v183_v54 }
 0x159   :  { %220 = vst.msk [vmem:[%s364_s2 + $0x28] sm:$0xff] %vm214_vm2, %v211_v53  ;;  %216 = vst.msk [vmem:[%s364_s2 + $0x8] sm:$0xff] %vm214_vm2, %v207_v55 }
 0x15a   :  { %v189_v56 = vpop.xlane.xlu1 %188  ;;  %v180_v58 = vpop.xlane.xlu0 %179 }
 0x15b   :  { %v209_v57 = vadd.f32 %v237_v51, %v189_v56  ;;  %v206_v59 = vadd.f32 %v237_v51, %v180_v58 }
 0x15d   :  { %218 = vst.msk [vmem:[%s364_s2 + $0x18] sm:$0xff] %vm214_vm2, %v209_v57  ;;  %215 = vst.msk [vmem:[%s364_s2] sm:$0xff] %vm214_vm2, %v206_v59 }
 0x15e   :  { %v186_v60 = vpop.xlane.xlu1 %185  ;;  %v192_v62 = vpop.xlane.xlu0 %191 }
 0x15f   :  { %v208_v61 = vadd.f32 %v237_v51, %v186_v60  ;;  %v210_v63 = vadd.f32 %v237_v51, %v192_v62 }
 0x161   :  { %217 = vst.msk [vmem:[%s364_s2 + $0x10] sm:$0xff] %vm214_vm2, %v208_v61  ;;  %219 = vst.msk [vmem:[%s364_s2 + $0x20] sm:$0xff] %vm214_vm2, %v210_v63 }
 0x162   :  { %v201_v0 = vpop.xlane.xlu1 %200  ;;  %v198_v2 = vpop.xlane.xlu0 %197 }
 0x163   :  { %v213_v1 = vadd.f32 %v237_v51, %v201_v0  ;;  %v212_v3 = vadd.f32 %v237_v51, %v198_v2 }
 0x165   :  { %222 = vst.msk [vmem:[%s364_s2 + $0x38] sm:$0xff] %vm214_vm2, %v213_v1  ;;  %221 = vst.msk [vmem:[%s364_s2 + $0x30] sm:$0xff] %vm214_vm2, %v212_v3 }

</bundles_post_ra>
